<compile_context>
chip_gen: v7x
topology: tpu7x:2x2x1
jax: 0.10.0
libtpu: 0.0.40
codegen_flags: <defaults>
</compile_context>

<pallas_src>
import jax
import jax.numpy as jnp
from jax.experimental import pallas as pl
from jax.experimental.pallas import tpu as pltpu

_EPS = 1e-6
_LANES = 128
_MAX_ROW_TILE = 1024   # 1024x128 f32 = 512 KiB/input tile
_NCORES = 2            # outer "parallel" split (2 TCs on v7x; serial on v5e/v6e)


def _round_up(x, m):
    return (x + m - 1) // m * m


def _make_kernel(n_elem, row_tile, with_mask):
    """Build the Charbonnier reduction kernel (masked or mask-free variant)."""
    tile_elems = row_tile * _LANES

    def kernel(*refs):
        if with_mask:
            x_ref, y_ref, m_ref, o_ref, acc_ref = refs
        else:
            x_ref, y_ref, o_ref, acc_ref = refs

        o = pl.program_id(0)           # outer ("parallel") core split
        i = pl.program_id(1)           # inner ("arbitrary") reduction axis
        n_inner = pl.num_programs(1)

        @pl.when(i == 0)
        def _():
            acc_ref[...] = jnp.zeros_like(acc_ref)

        # Flat element offset of this tile w.r.t. the original flat tensor.
        # (Uses the UNCLAMPED tile index, so duplicate clamped tiles land
        # entirely past n_elem and are zeroed by the masked branch.)
        tile_idx = o * n_inner + i
        base = tile_idx * tile_elems

        d = x_ref[...].astype(jnp.float32) - y_ref[...].astype(jnp.float32)
        val = jnp.sqrt(d * d + jnp.float32(_EPS))
        if with_mask:
            val = val * m_ref[...].astype(jnp.float32)

        is_full = (base + tile_elems) <= n_elem   # tile fully inside real data

        # Fast path: interior tile, no masking work at all.
        @pl.when(is_full)
        def _():
            acc_ref[...] += val

        # Slow path (boundary / duplicate tiles only): zero out lane padding,
        # block row overhang and clamped duplicate tiles via flat-index test.
        @pl.when(jnp.logical_not(is_full))
        def _():
            sub = jax.lax.broadcasted_iota(jnp.int32, (row_tile, _LANES), 0)
            lane = jax.lax.broadcasted_iota(jnp.int32, (row_tile, _LANES), 1)
            valid = (base + sub * _LANES + lane) < n_elem
            acc_ref[...] += jnp.where(valid, val, jnp.float32(0.0))

        @pl.when(i == n_inner - 1)
        def _():
            o_ref[0, 0] = jnp.sum(acc_ref[...])

    return kernel


def charbonnier_loss(img0, img1, mask=None):
    """Pallas equivalent of Charbonnier_Loss.forward."""
    assert img0.shape == img1.shape
    n_elem = img0.size  # divisor for the mean (matches torch .mean())

    operands = [img0.reshape(-1), img1.reshape(-1)]
    with_mask = mask is not None
    if with_mask:
        if mask.dtype == jnp.bool_:
            mask = mask.astype(jnp.float32)
        if mask.shape != img0.shape:
            # TODO(synk): small broadcastable masks could be tiled via their
            # own BlockSpec instead of materializing the broadcast.
            mask = jnp.broadcast_to(mask, img0.shape)
        operands.append(mask.reshape(-1))

    # Only pad up to lane alignment (<128 elems); the tail is masked in-kernel.
    if n_elem % _LANES != 0:
        pad = _LANES - n_elem % _LANES
        operands = [jnp.pad(a, (0, pad)) for a in operands]

    rows = operands[0].shape[0] // _LANES
    operands = [a.reshape(rows, _LANES) for a in operands]

    # Row-tile granularity respects sublane packing of the narrowest dtype.
    min_gran = 8
    for a in operands:
        if a.dtype.itemsize == 2:
            min_gran = max(min_gran, 16)
        elif a.dtype.itemsize == 1:
            min_gran = max(min_gran, 32)
    row_tile = min(_MAX_ROW_TILE, _round_up(rows, min_gran))

    row_tiles = pl.cdiv(rows, row_tile)
    ncores = min(_NCORES, row_tiles)          # no duplicate work for tiny inputs
    n_inner = pl.cdiv(row_tiles, ncores)

    # Clamp so no block start lies fully past the array; clamped duplicate
    # tiles contribute 0 via the in-kernel flat-index mask.
    def in_map(o, i):
        return (jnp.minimum(o * n_inner + i, row_tiles - 1), 0)

    tile_spec = pl.BlockSpec((row_tile, _LANES), in_map)

    partials = pl.pallas_call(
        _make_kernel(n_elem, row_tile, with_mask),
        out_shape=jax.ShapeDtypeStruct((ncores, 1), jnp.float32),
        grid_spec=pltpu.PrefetchScalarGridSpec(
            num_scalar_prefetch=0,
            grid=(ncores, n_inner),
            in_specs=[tile_spec] * len(operands),
            out_specs=pl.BlockSpec(
                (1, 1), lambda o, i: (o, 0), memory_space=pltpu.SMEM
            ),
            scratch_shapes=[pltpu.VMEM((row_tile, _LANES), jnp.float32)],
        ),
        compiler_params=pltpu.CompilerParams(
            dimension_semantics=("parallel", "arbitrary")
        ),
    )(*operands)

    return jnp.sum(partials) / jnp.float32(n_elem)


def _reference(img0, img1, mask=None):
    d2 = (img0.astype(jnp.float32) - img1.astype(jnp.float32)) ** 2
    c = jnp.sqrt(d2 + _EPS)
    if mask is not None:
        c = c * mask.astype(jnp.float32)
    return jnp.mean(c)


if __name__ == "__main__":
    key = jax.random.PRNGKey(0)
    k0, k1, k2 = jax.random.split(key, 3)

    shape = (2, 4, 16, 16)  # NCHW
    img0 = jax.random.normal(k0, shape, dtype=jnp.float32)
    img1 = jax.random.normal(k1, shape, dtype=jnp.float32)
    mask = (jax.random.uniform(k2, shape) > 0.5).astype(jnp.float32)

    # No-mask path (mask-free kernel variant)
    out = jax.block_until_ready(charbonnier_loss(img0, img1))
    ref = _reference(img0, img1)
    assert jnp.allclose(out, ref, rtol=1e-5, atol=1e-6), (out, ref)

    # Mask path
    out_m = jax.block_until_ready(charbonnier_loss(img0, img1, mask))
    ref_m = _reference(img0, img1, mask)
    assert jnp.allclose(out_m, ref_m, rtol=1e-5, atol=1e-6), (out_m, ref_m)

    # Non-lane-aligned shape exercises the in-kernel tail masking (slow path).
    shape2 = (2, 3, 7, 5)
    a = jax.random.normal(k0, shape2, dtype=jnp.float32)
    b = jax.random.normal(k1, shape2, dtype=jnp.float32)
    m2 = (jax.random.uniform(k2, shape2) > 0.5).astype(jnp.float32)
    out2 = jax.block_until_ready(charbonnier_loss(a, b, m2))
    ref2 = _reference(a, b, m2)
    assert jnp.allclose(out2, ref2, rtol=1e-5, atol=1e-6), (out2, ref2)

    # bf16 inputs exercise the native-dtype streaming + in-kernel f32 cast.
    a16 = jax.random.normal(k0, shape, dtype=jnp.bfloat16)
    b16 = jax.random.normal(k1, shape, dtype=jnp.bfloat16)
    out3 = jax.block_until_ready(charbonnier_loss(a16, b16))
    ref3 = _reference(a16, b16)
    assert jnp.allclose(out3, ref3, rtol=1e-4, atol=1e-5), (out3, ref3)

    print("KERNEL_OK")
</pallas_src>

<mosaic_0001>
module attributes {stable_mosaic.version = 11 : i64} {
  func.func @kernel(%arg0: i32, %arg1: i32, %arg2: memref<16x128xf32, #tpu.memory_space<vmem>>, %arg3: memref<16x128xf32, #tpu.memory_space<vmem>>, %arg4: memref<1x1xf32, #tpu.memory_space<smem>>, %arg5: memref<16x128xf32, #tpu.memory_space<vmem>>) attributes {dimension_semantics = [#tpu.dimension_semantics<parallel>, #tpu.dimension_semantics<arbitrary>], iteration_bounds = array<i64: 1, 1>, scalar_prefetch = 0 : i64, scratch_operands = 1 : i64, tpu.core_type = #tpu.core_type<tc>, window_params = [{transform_indices = @transform_0, window_bounds = array<i64: 16, 128>}, {transform_indices = @transform_1, window_bounds = array<i64: 16, 128>}, {transform_indices = @transform_2, window_bounds = array<i64: 1, 1>}]} {
    %c0_i32 = arith.constant 0 : i32
    %0 = arith.cmpi eq, %arg1, %c0_i32 : i32
    %1 = arith.extui %0 : i1 to i32
    %c0_i32_0 = arith.constant 0 : i32
    %2 = arith.cmpi ne, %1, %c0_i32_0 : i32
    scf.if %2 {
      %cst_10 = arith.constant 0.000000e+00 : f32
      %23 = vector.broadcast %cst_10 : f32 to vector<16x128xf32>
      %c0_11 = arith.constant 0 : index
      %c0_12 = arith.constant 0 : index
      %24 = vector.load %arg5[%c0_11, %c0_12] : memref<16x128xf32, #tpu.memory_space<vmem>>, vector<16x128xf32>
      tpu.vector_store %arg5[%c0_11, %c0_12], %23 {strides = array<i32>} : memref<16x128xf32, #tpu.memory_space<vmem>>, vector<16x128xf32>,
    } else {
    }
    %c1_i32 = arith.constant 1 : i32
    %3 = arith.muli %arg0, %c1_i32 : i32
    %4 = arith.addi %3, %arg1 : i32
    %c2048_i32 = arith.constant 2048 : i32
    %5 = arith.muli %4, %c2048_i32 : i32
    %c0 = arith.constant 0 : index
    %c0_1 = arith.constant 0 : index
    %6 = vector.load %arg2[%c0, %c0_1] : memref<16x128xf32, #tpu.memory_space<vmem>>, vector<16x128xf32>
    %c0_2 = arith.constant 0 : index
    %c0_3 = arith.constant 0 : index
    %7 = vector.load %arg3[%c0_2, %c0_3] : memref<16x128xf32, #tpu.memory_space<vmem>>, vector<16x128xf32>
    %8 = arith.subf %6, %7 : vector<16x128xf32>
    %9 = arith.mulf %8, %8 : vector<16x128xf32>
    %cst = arith.constant 9.99999997E-7 : f32
    %10 = vector.broadcast %cst : f32 to vector<16x128xf32>
    %11 = arith.addf %9, %10 : vector<16x128xf32>
    %12 = math.sqrt %11 : vector<16x128xf32>
    %c2048_i32_4 = arith.constant 2048 : i32
    %13 = arith.addi %5, %c2048_i32_4 : i32
    %c2048_i32_5 = arith.constant 2048 : i32
    %14 = arith.cmpi sle, %13, %c2048_i32_5 : i32
    %15 = arith.extui %14 : i1 to i32
    %c0_i32_6 = arith.constant 0 : i32
    %16 = arith.cmpi ne, %15, %c0_i32_6 : i32
    scf.if %16 {
      %c0_10 = arith.constant 0 : index
      %c0_11 = arith.constant 0 : index
      %23 = vector.load %arg5[%c0_10, %c0_11] : memref<16x128xf32, #tpu.memory_space<vmem>>, vector<16x128xf32>
      %24 = arith.addf %23, %12 : vector<16x128xf32>
      %c0_12 = arith.constant 0 : index
      %c0_13 = arith.constant 0 : index
      %25 = vector.load %arg5[%c0_12, %c0_13] : memref<16x128xf32, #tpu.memory_space<vmem>>, vector<16x128xf32>
      tpu.vector_store %arg5[%c0_12, %c0_13], %24 {strides = array<i32>} : memref<16x128xf32, #tpu.memory_space<vmem>>, vector<16x128xf32>,
    } else {
    }
    %true = arith.constant true
    %17 = arith.xori %14, %true : i1
    %18 = arith.extui %17 : i1 to i32
    %c0_i32_7 = arith.constant 0 : i32
    %19 = arith.cmpi ne, %18, %c0_i32_7 : i32
    scf.if %19 {
      %23 = tpu.iota {dimensions = array<i32: 0>} : vector<16x128xi32>
      %24 = tpu.iota {dimensions = array<i32: 1>} : vector<16x128xi32>
      %c128_i32 = arith.constant 128 : i32
      %25 = vector.broadcast %c128_i32 : i32 to vector<16x128xi32>
      %26 = arith.muli %23, %25 : vector<16x128xi32>
      %27 = vector.broadcast %5 : i32 to vector<16x128xi32>
      %28 = arith.addi %27, %26 : vector<16x128xi32>
      %29 = arith.addi %28, %24 : vector<16x128xi32>
      %c2048_i32_10 = arith.constant 2048 : i32
      %30 = vector.broadcast %c2048_i32_10 : i32 to vector<16x128xi32>
      %31 = arith.cmpi slt, %29, %30 : vector<16x128xi32>
      %c0_11 = arith.constant 0 : index
      %c0_12 = arith.constant 0 : index
      %32 = vector.load %arg5[%c0_11, %c0_12] : memref<16x128xf32, #tpu.memory_space<vmem>>, vector<16x128xf32>
      %cst_13 = arith.constant 0.000000e+00 : f32
      %33 = vector.broadcast %cst_13 : f32 to vector<16x128xf32>
      %34 = arith.select %31, %12, %33 : vector<16x128xi1>, vector<16x128xf32>
      %35 = arith.addf %32, %34 : vector<16x128xf32>
      %c0_14 = arith.constant 0 : index
      %c0_15 = arith.constant 0 : index
      %36 = vector.load %arg5[%c0_14, %c0_15] : memref<16x128xf32, #tpu.memory_space<vmem>>, vector<16x128xf32>
      tpu.vector_store %arg5[%c0_14, %c0_15], %35 {strides = array<i32>} : memref<16x128xf32, #tpu.memory_space<vmem>>, vector<16x128xf32>,
    } else {
    }
    %c0_i32_8 = arith.constant 0 : i32
    %20 = arith.cmpi eq, %arg1, %c0_i32_8 : i32
    %21 = arith.extui %20 : i1 to i32
    %c0_i32_9 = arith.constant 0 : i32
    %22 = arith.cmpi ne, %21, %c0_i32_9 : i32
    scf.if %22 {
      %c0_10 = arith.constant 0 : index
      %c0_11 = arith.constant 0 : index
      %23 = vector.load %arg5[%c0_10, %c0_11] : memref<16x128xf32, #tpu.memory_space<vmem>>, vector<16x128xf32>
      %24 = vector.shape_cast %23 : vector<16x128xf32> to vector<1x16x128xf32>
      %cst_12 = arith.constant dense<0.000000e+00> : vector<1xf32>
      %25 = vector.multi_reduction <add>, %24, %cst_12 [1, 2] : vector<1x16x128xf32> to vector<1xf32>
      %26 = vector.shape_cast %25 : vector<1xf32> to vector<1x1x1xf32>
      %27 = vector.extract %26[0, 0, 0] : f32 from vector<1x1x1xf32>
      %c0_13 = arith.constant 0 : index
      %c0_14 = arith.constant 0 : index
      %28 = memref.load %arg4[%c0_13, %c0_14] : memref<1x1xf32, #tpu.memory_space<smem>>
      memref.store %27, %arg4[%c0_13, %c0_14] : memref<1x1xf32, #tpu.memory_space<smem>>
    } else {
    }
    return
  }
  func.func @transform_0(%arg0: i32, %arg1: i32) -> (i32, i32) {
    %c1_i32 = arith.constant 1 : i32
    %0 = arith.muli %arg0, %c1_i32 : i32
    %1 = arith.addi %0, %arg1 : i32
    %c0_i32 = arith.constant 0 : i32
    %2 = arith.minsi %1, %c0_i32 : i32
    %c0_i32_0 = arith.constant 0 : i32
    %c0_i32_1 = arith.constant 0 : i32
    return %2, %c0_i32_0 : i32, i32
  }
  func.func @transform_1(%arg0: i32, %arg1: i32) -> (i32, i32) {
    %c1_i32 = arith.constant 1 : i32
    %0 = arith.muli %arg0, %c1_i32 : i32
    %1 = arith.addi %0, %arg1 : i32
    %c0_i32 = arith.constant 0 : i32
    %2 = arith.minsi %1, %c0_i32 : i32
    %c0_i32_0 = arith.constant 0 : i32
    %c0_i32_1 = arith.constant 0 : i32
    return %2, %c0_i32_0 : i32, i32
  }
  func.func @transform_2(%arg0: i32, %arg1: i32) -> (i32, i32) {
    %c0_i32 = arith.constant 0 : i32
    %c0_i32_0 = arith.constant 0 : i32
    return %arg0, %c0_i32 : i32, i32
  }
}

</mosaic_0001>

<bundles_post_ra>
// kernel: tpu_custom_call.1
= control target key start
LH: loop header
LB: loop body
LE: loop exit
PB: predicated region body
PF: predicated region fallthrough
CT: control target
= control target key end

     0   :  { %7 = vsyncpa [#allocation4], 0  ;;  %s292_s0 = inlined_call_operand.hbm [shape: f32[16,128], index: 0, kind: input, shape index: {}]   ;;  %s293_s1 = inlined_call_operand.hbm [shape: f32[16,128], index: 1, kind: input, shape index: {}]   ;;  %s294_s2 = inlined_call_operand.hbm [shape: f32[1,1], index: 2, kind: output, shape index: {}]  }
   0x1   :  { %8 = vsyncpa [#allocation7], 0 }
   0x2   :  { %9 = vsyncpa [#allocation5], 0  ;;  %s236_s9 = smov [#allocation3]   ;;  %s176_s13 = scalar_lea.hbm %s292_s0, 256 }
   0x3   :  { %s21_s10 = sshll.u32 %s236_s9, 4  ;;  %p177_p0 = scmp.ne.s32.totalorder %s292_s0, %s176_s13  ;;  %s22_s10 = int_to_ptr.vmem [resolvable:$true] %s21_s10 }
   0x4   :  { %p180_p1 = scmp.lt.u32.totalorder %s176_s13, %s292_s0 }
   0x6   :  { %p182_p2 = pnand %p180_p1, %p177_p0 }
   0x8   :  { %185 = shalt.err (!%p182_p2)
}
   0x9   :  { %s186_s18 = scalar_lea.vmem %s22_s10, 256  ;;  %p191_p4 = scmp.lt.s32.totalorder %s22_s10, %s22_s10 }
   0xa   :  { %p187_p3 = scmp.ne.s32.totalorder %s22_s10, %s186_s18  ;;  %p192_p5 = scmp.lt.s32.totalorder %s186_s18, %s186_s18 }
   0xc   :  { %p193_p6 = por %p192_p5, %p191_p4 }
   0xe   :  { %p194_p7 = pnand %p193_p6, %p187_p3 }
  0x10   :  { %197 = shalt.err (!%p194_p7)
}
  0x11   :  { %s237_s19 = smov 128   ;;  %s238_s20 = smov 8  }
  0x12   :  { %27 = dma.hbm_to_vmem [thread:$0]  %s292_s0, 256, %s22_s10, [#allocation4], %s237_s19, %s237_s19, %s238_s20  }
  0x13   :  { %s239_s23 = smov [#allocation6]   ;;  %s198_s27 = scalar_lea.hbm %s293_s1, 256 }
  0x14   :  { %s39_s24 = sshll.u32 %s239_s23, 4  ;;  %p199_p8 = scmp.ne.s32.totalorder %s293_s1, %s198_s27  ;;  %s40_s24 = int_to_ptr.vmem [resolvable:$true] %s39_s24 }
  0x15   :  { %p202_p9 = scmp.lt.u32.totalorder %s198_s27, %s293_s1 }
  0x17   :  { %p204_p10 = pnand %p202_p9, %p199_p8 }
  0x19   :  { %207 = shalt.err (!%p204_p10)
}
  0x1a   :  { %s208_s4 = scalar_lea.vmem %s40_s24, 256  ;;  %p213_p12 = scmp.lt.s32.totalorder %s40_s24, %s40_s24 }
  0x1b   :  { %p209_p11 = scmp.ne.s32.totalorder %s40_s24, %s208_s4  ;;  %p214_p13 = scmp.lt.s32.totalorder %s208_s4, %s208_s4 }
  0x1d   :  { %p215_p0 = por %p214_p13, %p213_p12 }
  0x1f   :  { %p216_p1 = pnand %p215_p0, %p209_p11 }
  0x21   :  { %219 = shalt.err (!%p216_p1)
}
  0x22   :  { %45 = dma.hbm_to_vmem [thread:$0]  %s293_s1, 256, %s40_s24, [#allocation7], %s237_s19, %s237_s19, %s238_s20  }
  0x23   :  { %230 = dma.done.wait [#allocation4], 256  }
  0x24   :  { %231 = vsyncadd [#allocation4], 4294967040 }
  0x25   :  { %232 = dma.done.wait [#allocation7], 256  }
  0x26   :  { %233 = vsyncadd [#allocation7], 4294967040  ;;  %v68_v0 = vld [vmem:[#allocation3] sm:$0xff]  ;;  %v69_v1 = vld [vmem:[#allocation3 + $0x8] sm:$0xff]  ;;  %s220_s8 = scalar_lea.hbm %s294_s2, 16 }
  0x27   :  { %v70_v2 = vld [vmem:[#allocation6] sm:$0xff]  ;;  %v71_v3 = vld [vmem:[#allocation6 + $0x8] sm:$0xff]  ;;  %p221_p2 = scmp.ne.s32.totalorder %s294_s2, %s220_s8  ;;  %p224_p3 = scmp.lt.u32.totalorder %s220_s8, %s294_s2 }
  0x28   :  { %v72_v4 = vsub.f32 %v68_v0, %v70_v2  ;;  %v73_v5 = vsub.f32 %v69_v1, %v71_v3 }
  0x29   :  { %p226_p4 = pnand %p224_p3, %p221_p2 }
  0x2a   :  { %v74_v6 = vmul.f32 %v72_v4, %v72_v4  ;;  %v75_v7 = vmul.f32 %v73_v5, %v73_v5 }
  0x2c   :  { %v76_v8 = vadd.f32 1e-06, %v74_v6  ;;  %v77_v9 = vadd.f32 1e-06, %v75_v7 }
  0x2e   :  { %172 = vrsqrt.f32 %v76_v8  ;;  %vm80_vm0 = vcmp.eq.f32.partialorder %v76_v8, inf  ;;  %v83_v11 = vand.u32 2147483648, %v76_v8  ;;  %vm82_vm1 = vcmp.eq.f32.partialorder %v76_v8, 0.0 }
  0x2f   :  { %174 = vrsqrt.f32 %v77_v9  ;;  %vm87_vm2 = vcmp.eq.f32.partialorder %v77_v9, inf  ;;  %v90_v14 = vand.u32 2147483648, %v77_v9  ;;  %vm89_vm3 = vcmp.eq.f32.partialorder %v77_v9, 0.0 }
  0x38   :  { %v173_v10 = vpop.eup %172 }
  0x39   :  { %v175_v12 = vpop.eup %174  ;;  %v79_v13 = vmul.f32 %v173_v10, %v76_v8 }
  0x3a   :  { %v86_v15 = vmul.f32 %v175_v12, %v77_v9 }
  0x3b   :  { %v81_v16 = vsel %vm80_vm0, %v76_v8, %v79_v13 }
  0x3c   :  { %v84_v17 = vsel %vm82_vm1, %v83_v11, %v81_v16  ;;  %v88_v18 = vsel %vm87_vm2, %v77_v9, %v86_v15 }
  0x3d   :  { %v91_v19 = vsel %vm89_vm3, %v90_v14, %v88_v18 }
  0x3e   :  { %v134_v20 = vadd.f32 %v91_v19, %v84_v17 }
  0x40   :  { %135 = vadd.xlane.f32.xlu0 %v134_v20 }
  0xcd   :  { %v136_v21 = vpop.xlane.xlu0 %135 }
  0xce   :  { %v137_v22 = vrot.slane %v136_v21, 4 }
  0xd0   :  { %v138_v23 = vadd.f32 %v137_v22, %v136_v21 }
  0xd2   :  { %v139_v24 = vrot.slane %v138_v23, 2 }
  0xd4   :  { %v140_v25 = vadd.f32 %v139_v24, %v138_v23 }
  0xd6   :  { %v141_v26 = vrot.slane %v140_v25, 1 }
  0xd8   :  { %v142_v27 = vadd.f32 %v141_v26, %v140_v25 }
  0xda   :  { %165 = vpush %v142_v27 }
 0x10b   :  { %s166_s1 = spop %165 }
 0x10c   :  { %145 = sst [smem:[#allocation8]] %s166_s1 }
 0x10d   :  { %229 = shalt.err (!%p226_p4)
}
 0x10e   :  { %s240_s13 = smov [#allocation8]  }
 0x10f   :  { %153 = dma.smem_to_hbm %s240_s13, 16, %s294_s2, [#allocation5]  }
 0x110   :  { %234 = dma.done.wait [#allocation5], 16  }
 0x111   :  { %235 = vsyncadd [#allocation5], 4294967280 }
 0x112   :  { %157 = sfence }
 0x113   :  { %158 = vsyncpa [#allocation4], 1 }
 0x114   :  { %159 = vsyncpa [#allocation7], 1 }
 0x115   :  { %160 = vsyncpa [#allocation5], 1 }

</bundles_post_ra>
